<compile_context>
chip_gen: v6e
topology: v6e:2x2x1
jax: 0.10.0
libtpu: 0.0.40
codegen_flags: <defaults>
</compile_context>

<pallas_src>
import functools
import math

import jax
import jax.numpy as jnp
from jax import lax
from jax.experimental import pallas as pl
from jax.experimental.pallas import tpu as pltpu


def _fmix32(h):
    """murmur3 finalizer: full-avalanche mix of uint32 values (VPU int ops only)."""
    h = h ^ (h >> 16)
    h = h * jnp.uint32(0x85EBCA6B)
    h = h ^ (h >> 13)
    h = h * jnp.uint32(0xC2B2AE35)
    h = h ^ (h >> 16)
    return h


# ---------------------------------------------------------------------------
# Kernel: elementwise add of the positional table + optional dropout.
#   x_ref / o_ref: (TS, D)   (leading batch dim squeezed by the BlockSpec)
#   pe_ref:        (TS, D)   (same dtype as x — pre-cast in the wrapper)
# ---------------------------------------------------------------------------
def _pe_dropout_kernel(seed_ref, x_ref, pe_ref, o_ref, *,
                       dropout_p: float, block_s: int):
    y = x_ref[...] + pe_ref[...]

    if dropout_p > 0.0:
        s = pl.program_id(0)          # seq-tile index (outer grid axis)
        b = pl.program_id(1)          # batch index   (inner grid axis)
        ts, d = y.shape

        # Counter-based PRNG keyed by (seed, batch, absolute row, column).
        # Independent across tiles/cores, deterministic per element.  Only ONE
        # full-size (ts, d) fmix pass; the row/col hashes are narrow arrays.
        key = _fmix32(seed_ref[0].astype(jnp.uint32)
                      + b.astype(jnp.uint32) * jnp.uint32(0x9E3779B9))
        row = (lax.broadcasted_iota(jnp.int32, (ts, 1), 0)
               + s * block_s).astype(jnp.uint32)
        col = lax.broadcasted_iota(jnp.int32, (1, d), 1).astype(jnp.uint32)
        h_row = _fmix32(key + row * jnp.uint32(0x9E3779B1))      # (ts, 1)
        h_col = col * jnp.uint32(0x85EBCA77)                     # (1, d)
        bits = _fmix32(h_row ^ h_col)                            # (ts, d) — one full pass

        # 32-bit threshold: P(keep) = keep_thresh / 2^32 ~= 1 - p.
        keep_thresh = jnp.uint32(
            min(int(round((1.0 - dropout_p) * 4294967296.0)), 0xFFFFFFFF))
        keep = bits < keep_thresh
        y = jnp.where(keep, y * (1.0 / (1.0 - dropout_p)), 0.0)

    o_ref[...] = y.astype(o_ref.dtype)


# ---------------------------------------------------------------------------
# pallas_call driver (x: [B, R, D], pe: [L, D] with L >= R, same dtype)
# ---------------------------------------------------------------------------
def _pe_call(x, pe, dropout_p, seed):
    B, R, D = x.shape
    L = pe.shape[0]
    itemsize = jnp.dtype(x.dtype).itemsize

    # ~4 MiB seq tiles amortize per-grid-step pipeline overhead; D kept whole so
    # the lane axis stays dense.  Pipelined footprint ~6 tiles = ~24 MiB.
    target_tile_bytes = 4 * 1024 * 1024
    ts = min(R, max(8, target_tile_bytes // (D * itemsize)))
    if ts % 8 != 0 and R >= 8:
        ts = (ts // 8) * 8                      # (8, 128) tiling constraint
    grid_s = pl.cdiv(R, ts)

    # pe's block first dim must be 8-aligned or equal pe's full first dim; only
    # for tiny/odd shapes (R < 8 and R != L) do we pay a one-time slice.
    if ts % 8 != 0 and ts != L:
        pe = pe[:R]

    seed_arr = jnp.asarray([seed], dtype=jnp.int32)
    kernel = functools.partial(_pe_dropout_kernel,
                               dropout_p=float(dropout_p), block_s=ts)

    return pl.pallas_call(
        kernel,
        out_shape=jax.ShapeDtypeStruct((B, R, D), x.dtype),
        grid_spec=pltpu.PrefetchScalarGridSpec(
            num_scalar_prefetch=1,              # seed lives in SMEM
            # Seq tiles OUTER, batch INNER: pe's block index is batch-invariant,
            # so consecutive inner steps reuse the resident pe tile (no re-DMA).
            grid=(grid_s, B),
            in_specs=[
                # x: batch dim squeezed, seq tiled, D whole (lane-dense).
                pl.BlockSpec((None, ts, D), lambda s, b, seed: (b, s, 0)),
                # pe: tracks the seq tile only; reused across the batch axis.
                pl.BlockSpec((ts, D), lambda s, b, seed: (s, 0)),
            ],
            out_specs=pl.BlockSpec((None, ts, D), lambda s, b, seed: (b, s, 0)),
        ),
        compiler_params=pltpu.CompilerParams(
            # Counter PRNG has no cross-step state -> both axes parallel; the
            # long seq-tile axis is outermost so v7x's two TensorCores get
            # balanced shards even at batch 1-2.
            dimension_semantics=("parallel", "parallel"),
            vmem_limit_bytes=32 * 1024 * 1024,
        ),
    )(seed_arr, x, pe)


# ---------------------------------------------------------------------------
# Public wrapper: dtype match + lane packing for small d_model
# ---------------------------------------------------------------------------
def positional_encoding_forward(x, pe, *, dropout_p: float = 0.0, seed: int = 0):
    """x: [B, S, D], pe: [L, D] with L >= S.  Returns dropout(x + pe[:S])."""
    B, S, D = x.shape
    L = pe.shape[0]
    if L < S:
        raise ValueError(f"pe buffer too short: {L} < {S}")
    if not (0.0 <= dropout_p < 1.0):
        raise ValueError(f"dropout_p must be in [0, 1), got {dropout_p}")

    # Pre-cast pe once (bandwidth + in-kernel convert savings when x is bf16).
    pe = pe.astype(x.dtype)

    # Lane-packing for small d_model: with D < 128 every store would be a
    # masked vst.msk on a fraction of a vreg lane.  When the element layout
    # allows it, reshape to 128-wide rows so loads/stores are lane-dense.  The
    # dropout mask is i.i.d. per element, so keying the PRNG off the packed
    # (row, col) is still a valid Bernoulli(1-p) mask.
    if D < 128 and 128 % D == 0 and (S * D) % 128 == 0:
        R = (S * D) // 128
        x_packed = x.reshape(B, R, 128)
        pe_packed = pe[:S].reshape(R, 128)
        out = _pe_call(x_packed, pe_packed, dropout_p, seed)
        return out.reshape(B, S, D)

    return _pe_call(x, pe, dropout_p, seed)


# ---------------------------------------------------------------------------
# Deterministic buffer construction (module __init__ equivalent, plain JAX glue)
# ---------------------------------------------------------------------------
def make_pe_buffer(d_model: int, seq_len: int) -> jnp.ndarray:
    position = jnp.arange(seq_len, dtype=jnp.float32)[:, None]           # [L, 1]
    div_term = jnp.exp(
        jnp.arange(0, d_model, 2, dtype=jnp.float32)
        * (-math.log(10000.0) / d_model)
    )                                                                    # [D/2]
    pe = jnp.zeros((seq_len, d_model), dtype=jnp.float32)
    pe = pe.at[:, 0::2].set(jnp.sin(position * div_term))
    pe = pe.at[:, 1::2].set(jnp.cos(position * div_term))
    return pe


if __name__ == "__main__":
    key = jax.random.PRNGKey(0)

    # --- Case 1: small d_model (exercises the lane-packing path) -------------
    batch, seq, d_model = 2, 8, 32
    buffer_seq_len = 16            # pe buffer longer than the actual sequence
    dropout_p = 0.1

    x = jax.random.normal(key, (batch, seq, d_model), dtype=jnp.float32)
    pe = make_pe_buffer(d_model, buffer_seq_len)
    ref = x + pe[None, :seq, :]

    out_eval = jax.block_until_ready(
        positional_encoding_forward(x, pe, dropout_p=0.0))
    assert out_eval.shape == (batch, seq, d_model)
    assert jnp.allclose(out_eval, ref, atol=1e-6), "eval-mode mismatch vs reference"

    out_drop = jax.block_until_ready(
        positional_encoding_forward(x, pe, dropout_p=dropout_p, seed=42))
    scale = 1.0 / (1.0 - dropout_p)
    is_dropped = jnp.isclose(out_drop, 0.0, atol=1e-6)
    is_scaled = jnp.isclose(out_drop, ref * scale, rtol=1e-5, atol=1e-5)
    assert bool(jnp.all(is_dropped | is_scaled)), "dropout output not {0, scaled}-valued"
    assert bool(jnp.any(is_dropped)) and bool(jnp.any(~is_dropped)), "degenerate dropout mask"

    # --- Case 2: d_model >= 128 (exercises the general streaming path) -------
    batch2, seq2, d_model2 = 2, 16, 128
    x2 = jax.random.normal(jax.random.PRNGKey(1), (batch2, seq2, d_model2),
                           dtype=jnp.float32)
    pe2 = make_pe_buffer(d_model2, 32)
    ref2 = x2 + pe2[None, :seq2, :]

    out2_eval = jax.block_until_ready(
        positional_encoding_forward(x2, pe2, dropout_p=0.0))
    assert jnp.allclose(out2_eval, ref2, atol=1e-6), "eval-mode mismatch (D=128)"

    out2_drop = jax.block_until_ready(
        positional_encoding_forward(x2, pe2, dropout_p=dropout_p, seed=7))
    is_dropped2 = jnp.isclose(out2_drop, 0.0, atol=1e-6)
    is_scaled2 = jnp.isclose(out2_drop, ref2 * scale, rtol=1e-5, atol=1e-5)
    assert bool(jnp.all(is_dropped2 | is_scaled2)), "dropout output not {0, scaled}-valued (D=128)"
    assert bool(jnp.any(is_dropped2)) and bool(jnp.any(~is_dropped2)), "degenerate dropout mask (D=128)"

    print("KERNEL_OK")
</pallas_src>

<mosaic_0001>
module attributes {stable_mosaic.version = 11 : i64} {
  func.func @_pe_dropout_kernel(%arg0: i32, %arg1: i32, %arg2: memref<1xi32, #tpu.memory_space<smem>>, %arg3: memref<1x2x128xf32, #tpu.memory_space<vmem>>, %arg4: memref<2x128xf32, #tpu.memory_space<vmem>>, %arg5: memref<1x2x128xf32, #tpu.memory_space<vmem>>) attributes {dimension_semantics = [#tpu.dimension_semantics<parallel>, #tpu.dimension_semantics<parallel>], iteration_bounds = array<i64: 1, 2>, scalar_prefetch = 1 : i64, scratch_operands = 0 : i64, tpu.core_type = #tpu.core_type<tc>, window_params = [{transform_indices = @transform_0, window_bounds = array<i64: 1, 2, 128>}, {transform_indices = @transform_1, window_bounds = array<i64: 2, 128>}, {transform_indices = @transform_2, window_bounds = array<i64: 1, 2, 128>}]} {
    %c0 = arith.constant 0 : index
    %c0_0 = arith.constant 0 : index
    %c0_1 = arith.constant 0 : index
    %0 = vector.load %arg3[%c0, %c0_0, %c0_1] : memref<1x2x128xf32, #tpu.memory_space<vmem>>, vector<1x2x128xf32>
    %1 = vector.shape_cast %0 : vector<1x2x128xf32> to vector<2x128xf32>
    %c0_2 = arith.constant 0 : index
    %c0_3 = arith.constant 0 : index
    %2 = vector.load %arg4[%c0_2, %c0_3] : memref<2x128xf32, #tpu.memory_space<vmem>>, vector<2x128xf32>
    %3 = arith.addf %1, %2 : vector<2x128xf32>
    %c0_4 = arith.constant 0 : index
    %c0_5 = arith.constant 0 : index
    %c0_6 = arith.constant 0 : index
    %4 = vector.load %arg5[%c0_4, %c0_5, %c0_6] : memref<1x2x128xf32, #tpu.memory_space<vmem>>, vector<1x2x128xf32>
    %5 = vector.shape_cast %4 : vector<1x2x128xf32> to vector<2x128xf32>
    %6 = vector.shape_cast %3 : vector<2x128xf32> to vector<1x2x128xf32>
    tpu.vector_store %arg5[%c0_4, %c0_5, %c0_6], %6 {strides = array<i32>} : memref<1x2x128xf32, #tpu.memory_space<vmem>>, vector<1x2x128xf32>,
    return
  }
  func.func @transform_0(%arg0: i32, %arg1: i32, %arg2: memref<1xi32, #tpu.memory_space<smem>>) -> (i32, i32, i32) {
    %c0_i32 = arith.constant 0 : i32
    %c0_i32_0 = arith.constant 0 : i32
    return %arg1, %arg0, %c0_i32 : i32, i32, i32
  }
  func.func @transform_1(%arg0: i32, %arg1: i32, %arg2: memref<1xi32, #tpu.memory_space<smem>>) -> (i32, i32) {
    %c0_i32 = arith.constant 0 : i32
    %c0_i32_0 = arith.constant 0 : i32
    return %arg0, %c0_i32 : i32, i32
  }
  func.func @transform_2(%arg0: i32, %arg1: i32, %arg2: memref<1xi32, #tpu.memory_space<smem>>) -> (i32, i32, i32) {
    %c0_i32 = arith.constant 0 : i32
    %c0_i32_0 = arith.constant 0 : i32
    return %arg1, %arg0, %c0_i32 : i32, i32, i32
  }
}

</mosaic_0001>

<bundles_post_ra>
// kernel: tpu_custom_call.1
= control target key start
LH: loop header
LB: loop body
LE: loop exit
PB: predicated region body
PF: predicated region fallthrough
CT: control target
= control target key end

     0   :  { %9 = vsyncpa [#allocation5], 0  ;;  %s654_s0 = inlined_call_operand.<no memory space> [shape: s32[1], index: 0, kind: input, shape index: {}]   ;;  %s655_s1 = inlined_call_operand.hbm [shape: f32[2,2,128], index: 1, kind: input, shape index: {}]   ;;  %s656_s2 = inlined_call_operand.vmem [shape: f32[2,128], index: 2, kind: input, shape index: {}]   ;;  %s657_s3 = inlined_call_operand.hbm [shape: f32[2,2,128], index: 3, kind: output, shape index: {}]  }
   0x1   :  { %11 = vsyncpa [#allocation5 + $0x1], 0 }
   0x2   :  { %12 = vsyncpa [#allocation6], 0 }
   0x3   :  { %14 = vsyncpa [#allocation6 + $0x1], 0  ;;  %s517_s12 = smov 0   ;;  %s519_s13 = smov 0  }
   0x4   :  { %s521_s14 = smov 0   ;;  %s523_s0 = smov 0  }
   0x5   :  { %s525_s15 = smov 0   ;;  %s527_s16 = smov 0  }
   0x6 LB: > { %s309_s17 = sadd.s32 4294967295, %s493_s16   ;;  %s310_s18 = sadd.s32 4294967294, %s493_s16   ;;  %s493_s16 = sphi %s527_s16, %s20_s16   ;;  %s489_s15 = sphi %s525_s15, %s669_s15   ;;  %s485_s0 = sphi %s523_s0, %s668_s0   ;;  %s481_s14 = sphi %s521_s14, %s667_s14   ;;  %s477_s13 = sphi %s519_s13, %s666_s13   ;;  %s473_s12 = sphi %s517_s12, %s665_s12  }
   0x7   : > { %s29_s19 = sadd.s32 1, %s489_s15  ;;  %s41_s20 = sadd.s32 1, %s481_s14 }
   0x8   : > { %p30_p0 = scmp.ge.s32.totalorder %s29_s19, 2  ;;  %p48_p1 = scmp.ne.s32.totalorder %s481_s14, %s477_s13 }
   0x9   : > { %p49_p2 = scmp.eq.s32.totalorder %s493_s16, 0  ;;  %p54_p3 = scmp.ne.s32.totalorder %s477_s13, %s473_s12 }
   0xa   : > { %s671_s19 = smov (%p30_p0, %s29_s19), 0  ;;  %p55_p5 = scmp.eq.s32.totalorder %s309_s17, 0 }
   0xb   : > { %p558_p4 = por %p49_p2, %p48_p1  ;;  %s36_s22 = ssub.s32 %s489_s15, %s671_s19 }
   0xc   : > { %p106_p6 = scmp.eq.s32.totalorder %s309_s17, 1  ;;  %p39_p7 = scmp.eq.s32.totalorder %s36_s22, 0 }
   0xd   : > { %p564_p8 = por %p55_p5, %p54_p3  ;;  %p112_p10 = scmp.eq.s32.totalorder %s310_s18, 1 }
   0xe   : > { %p568_p9 = por %p106_p6, %p48_p1  ;;  %p335_p13 = scmp.lt.s32.totalorder %s493_s16, 2 }
   0xf   : > { %s573_s25 = scalar_select %p39_p7, %s481_s14, %s41_s20  }
  0x10   : > { %p575_p11 = por %p112_p10, %p54_p3  ;;  %s139_s27 = sand.u32 1, %s481_s14  }
  0x11   : > { %s314_s28 = sshll.u32 %s139_s27, 1  ;;  %s315_s29 = sshll.u32 %s489_s15, 5 }
  0x12   : > { %s661_s26 = scalar_select %p575_p11, 1, 0 }
  0x13   : > { %s149_s5 = scalar_lea.hbm %s655_s1, %s315_s29  ;;  %s143_s6 = scalar_lea.vmem [#allocation4], %s314_s28 }
  0x14   : > { %s151_s7 = sshll.u32 %s143_s6, 4  ;;  %p588_p0 = pnand %p335_p13, %p558_p4  ;;  %s152_s7 = int_to_ptr.vmem [resolvable:$true] %s151_s7 }
  0x15   : > { %p316_p1 = scmp.ge.s32.totalorder %s493_s16, 1  ;;  %p156_p2 = scmp.lt.s32.totalorder %s493_s16, 3 }
  0x16   : > { %s140_s9 = scalar_lea.sflag [#allocation5], %s139_s27  ;;  %p387_p3 = pneg %p588_p0 }
  0x17   : > { %s398_s10 = scalar_lea.vmem %s152_s7, 32  ;;  %s495_s11 = smov [#allocation4]  }
  0x18   : > { %p399_p5 = scmp.ne.s32.totalorder %s152_s7, %s398_s10  ;;  %s403_s17 = sshll.u32 %s495_s11, 4  ;;  %s404_s17 = int_to_ptr.vmem [resolvable:$false] %s403_s17 }
  0x19   : > { %s405_s18 = scalar_lea.vmem %s404_s17, 64  ;;  %p406_p10 = scmp.lt.s32.totalorder %s152_s7, %s404_s17 }
  0x1a   : > { %p401_p6 = pnand %p399_p5, %p387_p3  ;;  %p407_p12 = scmp.lt.s32.totalorder %s405_s18, %s398_s10 }
  0x1c   : > { %p402_p7 = pneg %p401_p6  ;;  %p408_p4 = por %p407_p12, %p406_p10 }
  0x1e   : > { %p409_p13 = pnand %p408_p4, %p402_p7 }
  0x20   : > { %412 = shalt.err (!%p409_p13)
}
  0x21   : > { %330 = dma.hbm_to_vmem [thread:$0]  (!%p588_p0), %s149_s5, 32, %s152_s7, %s140_s9  }
  0x22   : > { %p157_p11 = pnand %p316_p1, %p156_p2 }
  0x23   : > { %s603_s20 = sand.u32 (!%p157_p11), 1, %s477_s13  }
  0x24   : > { %160 = sbr.rel (%p157_p11) target bundleno = 66 (0x42), region = 28  ;;  %s317_s21 = sshll.u32 (!%p157_p11), %s603_s20, 1 }
  0x25   : > { %s163_s22 = scalar_lea.sflag (!%p157_p11), [#allocation5], %s603_s20  ;;  %s166_s27 = scalar_lea.vmem (!%p157_p11), [#allocation4], %s317_s21 }
  0x29   : > { %464 = dma.done.wait (%p564_p8), %s163_s22, 32  }
  0x2a   : > { %466 = vsyncadd (%p564_p8), %s163_s22, 4294967264  ;;  %s190_s28 = scalar_lea.vmem [#allocation7], %s317_s21  ;;  %s320_s30 = sshll.u32 %s485_s0, 5  ;;  %v195_v0 = vld [vmem:[%s166_s27] sm:$0x3] }
  0x2b   : > { %s214_s29 = sshll.u32 %s190_s28, 4  ;;  %v196_v1 = vld [vmem:[%s656_s2] sm:$0x3]  ;;  %s212_s8 = scalar_lea.hbm %s657_s3, %s320_s30  ;;  %s215_s29 = int_to_ptr.vmem [resolvable:$true] %s214_s29 }
  0x2c   : > { %v197_v2 = vadd.f32 %v196_v1, %v195_v0  ;;  %s200_s23 = scalar_lea.sflag [#allocation6], %s603_s20  ;;  %s413_s9 = scalar_lea.vmem %s215_s29, 32 }
  0x2d   : > { %p414_p8 = scmp.ne.s32.totalorder %s215_s29, %s413_s9  ;;  %s496_s10 = smov [#allocation7]  }
  0x2e   : > { %198 = vst [vmem:[%s190_s28] sm:$0x3] %v197_v2  ;;  %s417_s0 = sshll.u32 %s496_s10, 4  ;;  %s418_s0 = int_to_ptr.vmem [resolvable:$false] %s417_s0 }
  0x2f   : > { %p415_p11 = pnand %p414_p8, %p568_p9  ;;  %s419_s11 = scalar_lea.vmem %s418_s0, 64 }
  0x30   : > { %p420_p0 = scmp.lt.s32.totalorder %s215_s29, %s418_s0  ;;  %p421_p1 = scmp.lt.s32.totalorder %s419_s11, %s413_s9 }
  0x31   : > { %p416_p12 = pneg %p415_p11 }
  0x32   : > { %p422_p2 = por %p421_p1, %p420_p0 }
  0x34   : > { %p423_p3 = pnand %p422_p2, %p416_p12 }
  0x36   : > { %426 = shalt.err (!%p423_p3)
}
  0x37   : > { %s427_s17 = scalar_lea.hbm %s212_s8, 32  ;;  %s431_s21 = scalar_lea.hbm %s657_s3, 64 }
  0x38   : > { %p428_p5 = scmp.ne.s32.totalorder %s212_s8, %s427_s17  ;;  %p432_p10 = scmp.lt.s32.totalorder %s212_s8, %s657_s3 }
  0x39   : > { %p433_p4 = scmp.lt.s32.totalorder %s431_s21, %s427_s17 }
  0x3a   : > { %p429_p6 = pnand %p428_p5, %p568_p9 }
  0x3b   : > { %p434_p13 = por %p433_p4, %p432_p10 }
  0x3c   : > { %p430_p7 = pneg %p429_p6 }
  0x3e   : > { %p435_p8 = pnand %p434_p13, %p430_p7 }
  0x40   : > { %438 = shalt.err (!%p435_p8)
}
  0x41   : > { %325 = dma.vmem_to_hbm [thread:$0]  (%p568_p9), %s215_s29, 32, %s212_s8, %s200_s23  }
  0x42 PF: > { %s226_s28 = sand.u32 1, %s473_s12   ;;  %p663_p11 = scmp.ne.s32.totalorder %s661_s26, 0 }
  0x43   : > { %p664_p12 = scmp.ge.s32.totalorder %s493_s16, 2  ;;  %s227_s30 = scalar_lea.sflag [#allocation6], %s226_s28 }
  0x45   : > { %p332_p0 = pnand %p664_p12, %p663_p11 }
  0x47   : > { %p333_p1 = pneg %p332_p0 }
  0x49   : > { %468 = dma.done.wait (%p333_p1), %s227_s30, 32  }
  0x4a   : > { %470 = vsyncadd (%p333_p1), %s227_s30, 4294967264  ;;  %s20_s16 = sadd.s32 1, %s493_s16   ;;  %s665_s12 = smov %s477_s13 }
  0x4b   : > { %p17_p2 = scmp.ge.s32.totalorder %s20_s16, 4   ;;  %s666_s13 = smov %s481_s14 }
  0x4c   : > { %s667_s14 = smov %s573_s25  ;;  %s668_s0 = smov %s489_s15 }
  0x4d   : > { %s669_s15 = smov %s671_s19  ;;  %19 = sbr.rel (!%p17_p2) target bundleno = 6 (0x6), region = 76 }
  0x52   :  { %232 = vsyncpa [#allocation5], 1 }
  0x53   :  { %234 = vsyncpa [#allocation5 + $0x1], 1 }
  0x54   :  { %235 = vsyncpa [#allocation6], 1 }
  0x55   :  { %237 = vsyncpa [#allocation6 + $0x1], 1 }

</bundles_post_ra>
